<compile_context>
chip_gen: v7x
topology: tpu7x:2x2x1
jax: 0.10.0
libtpu: 0.0.40
codegen_flags: <defaults>
</compile_context>

<pallas_src>
import jax
import jax.numpy as jnp
from jax.experimental import pallas as pl
from jax.experimental.pallas import tpu as pltpu

EPS = 1e-5


def predictor_kernel(x_ref, w1_ref, gb_ref, w2_ref, b2_ref, o_ref):
    # ---- Linear 1: [B, D_in] @ [D_in, H]  (bias omitted: cancelled by BN) ----
    h = jnp.dot(x_ref[...], w1_ref[...], preferred_element_type=jnp.float32)

    # ---- BatchNorm1d, training mode (batch mean, biased variance, eps=1e-5) ----
    # One sweep over h: sum and sum-of-squares, then fold gamma/beta into a
    # single per-feature scale/shift so the per-element work is one mul + add.
    inv_b = 1.0 / h.shape[0]
    s1 = jnp.sum(h, axis=0, keepdims=True)            # [1, H]
    s2 = jnp.sum(h * h, axis=0, keepdims=True)        # [1, H]
    mean = s1 * inv_b
    var = jnp.maximum(s2 * inv_b - mean * mean, 0.0)  # clamp: guards cancellation
    gamma = gb_ref[0:1, :]
    beta = gb_ref[1:2, :]
    scale = jax.lax.rsqrt(var + EPS) * gamma          # [1, H]
    shift = beta - mean * scale                       # [1, H]

    # ---- BN affine + ReLU fused ----
    h = jnp.maximum(h * scale + shift, 0.0)

    # ---- Linear 2: [B, H] @ [H, D_out_padded] + [1, D_out_padded] ----
    out = jnp.dot(h, w2_ref[...], preferred_element_type=jnp.float32)
    o_ref[...] = out + b2_ref[...]


def predictor_forward(x, w1, b1, gamma, beta, w2, b2):
    # b1 intentionally unused: exact cancellation by training-mode BatchNorm.
    del b1
    B, d_in = x.shape
    H, d_out = w2.shape

    # Pad output features to a lane-dense multiple of 128 (unmasked stores,
    # full-width MXU N dimension on the second matmul). Zero-padded columns
    # are sliced away below.
    d_pad = max(128, ((d_out + 127) // 128) * 128)
    w2p = jnp.pad(w2, ((0, 0), (0, d_pad - d_out)))
    b2p = jnp.pad(b2, ((0, 0), (0, d_pad - d_out)))

    # Pack the tiny per-feature vectors into a single operand (fewer DMAs).
    gb = jnp.concatenate([gamma, beta], axis=0)       # [2, H]

    flops = 2 * B * (d_in * H + H * d_pad)
    bytes_accessed = 4 * (x.size + w1.size + gb.size + w2p.size + b2p.size + B * d_pad)

    out = pl.pallas_call(
        predictor_kernel,
        out_shape=jax.ShapeDtypeStruct((B, d_pad), jnp.float32),
        in_specs=[pl.BlockSpec(memory_space=pltpu.MemorySpace.VMEM)] * 5,
        out_specs=pl.BlockSpec(memory_space=pltpu.MemorySpace.VMEM),
        cost_estimate=pl.CostEstimate(
            flops=flops, transcendentals=0, bytes_accessed=bytes_accessed),
    )(x, w1, gb, w2p, b2p)
    return out[:, :d_out]


def init_params(key, input_dim, hidden_dim, output_dim):
    k1, k2, k3, k4 = jax.random.split(key, 4)
    # Deterministic init mimicking PyTorch Linear default (uniform +/- 1/sqrt(fan_in)).
    lim1 = 1.0 / jnp.sqrt(input_dim)
    lim2 = 1.0 / jnp.sqrt(hidden_dim)
    w1 = jax.random.uniform(k1, (input_dim, hidden_dim), jnp.float32, -lim1, lim1)
    b1 = jax.random.uniform(k2, (1, hidden_dim), jnp.float32, -lim1, lim1)
    gamma = jnp.ones((1, hidden_dim), jnp.float32)   # BatchNorm1d weight init = 1
    beta = jnp.zeros((1, hidden_dim), jnp.float32)   # BatchNorm1d bias init = 0
    w2 = jax.random.uniform(k3, (hidden_dim, output_dim), jnp.float32, -lim2, lim2)
    b2 = jax.random.uniform(k4, (1, output_dim), jnp.float32, -lim2, lim2)
    return w1, b1, gamma, beta, w2, b2


def reference_forward(x, w1, b1, gamma, beta, w2, b2):
    # Faithful PyTorch semantics, including the Linear-1 bias (which the kernel
    # omits because BN cancels it) and the classic two-pass variance.
    h = x @ w1 + b1
    mean = h.mean(axis=0, keepdims=True)
    var = ((h - mean) ** 2).mean(axis=0, keepdims=True)   # biased, like BN training
    h = (h - mean) / jnp.sqrt(var + EPS) * gamma + beta
    h = jnp.maximum(h, 0.0)
    return h @ w2 + b2


if __name__ == "__main__":
    B, INPUT_DIM, HIDDEN_DIM, OUTPUT_DIM = 8, 32, 512, 50

    key = jax.random.PRNGKey(0)
    kx, kp = jax.random.split(key)
    x = jax.random.normal(kx, (B, INPUT_DIM), jnp.float32)
    params = init_params(kp, INPUT_DIM, HIDDEN_DIM, OUTPUT_DIM)

    out = predictor_forward(x, *params)
    out = jax.block_until_ready(out)

    ref = reference_forward(x, *params)
    assert out.shape == (B, OUTPUT_DIM)
    assert jnp.allclose(out, ref, atol=1e-4, rtol=1e-4), "mismatch vs reference"

    print("KERNEL_OK")
</pallas_src>

<mosaic_0001>
module attributes {stable_mosaic.version = 11 : i64} {
  func.func @predictor_kernel(%arg0: memref<8x32xf32, #tpu.memory_space<vmem>>, %arg1: memref<32x512xf32, #tpu.memory_space<vmem>>, %arg2: memref<2x512xf32, #tpu.memory_space<vmem>>, %arg3: memref<512x128xf32, #tpu.memory_space<vmem>>, %arg4: memref<1x128xf32, #tpu.memory_space<vmem>>, %arg5: memref<8x128xf32, #tpu.memory_space<vmem>>) attributes {dimension_semantics = [], scalar_prefetch = 0 : i64, scratch_operands = 0 : i64, tpu.core_type = #tpu.core_type<tc>} {
    %c0 = arith.constant 0 : index
    %c0_0 = arith.constant 0 : index
    %0 = vector.load %arg0[%c0, %c0_0] : memref<8x32xf32, #tpu.memory_space<vmem>>, vector<8x32xf32>
    %c0_1 = arith.constant 0 : index
    %c0_2 = arith.constant 0 : index
    %1 = vector.load %arg1[%c0_1, %c0_2] : memref<32x512xf32, #tpu.memory_space<vmem>>, vector<32x512xf32>
    %cst = arith.constant dense<0.000000e+00> : vector<8x512xf32>
    %2 = tpu.matmul %0, %1, %cst {dimension_numbers = #tpu.dot_dimension_numbers<[1], [0], [0], [1], [0, 0, 1, 1], [], []>} : vector<8x32xf32>, vector<32x512xf32>, vector<8x512xf32> -> vector<8x512xf32>
    %cst_3 = arith.constant dense<0.000000e+00> : vector<512xf32>
    %3 = vector.multi_reduction <add>, %2, %cst_3 [0] : vector<8x512xf32> to vector<512xf32>
    %4 = vector.shape_cast %3 : vector<512xf32> to vector<1x512xf32>
    %5 = arith.mulf %2, %2 : vector<8x512xf32>
    %cst_4 = arith.constant dense<0.000000e+00> : vector<512xf32>
    %6 = vector.multi_reduction <add>, %5, %cst_4 [0] : vector<8x512xf32> to vector<512xf32>
    %7 = vector.shape_cast %6 : vector<512xf32> to vector<1x512xf32>
    %cst_5 = arith.constant 1.250000e-01 : f32
    %8 = vector.broadcast %cst_5 : f32 to vector<1x512xf32>
    %9 = arith.mulf %4, %8 : vector<1x512xf32>
    %cst_6 = arith.constant 1.250000e-01 : f32
    %10 = vector.broadcast %cst_6 : f32 to vector<1x512xf32>
    %11 = arith.mulf %7, %10 : vector<1x512xf32>
    %12 = arith.mulf %9, %9 : vector<1x512xf32>
    %13 = arith.subf %11, %12 : vector<1x512xf32>
    %cst_7 = arith.constant 0.000000e+00 : f32
    %14 = vector.broadcast %cst_7 : f32 to vector<1x512xf32>
    %15 = arith.maximumf %13, %14 : vector<1x512xf32>
    %c0_8 = arith.constant 0 : index
    %c0_9 = arith.constant 0 : index
    %16 = vector.load %arg2[%c0_8, %c0_9] : memref<2x512xf32, #tpu.memory_space<vmem>>, vector<1x512xf32>
    %c1 = arith.constant 1 : index
    %c0_10 = arith.constant 0 : index
    %17 = vector.load %arg2[%c1, %c0_10] : memref<2x512xf32, #tpu.memory_space<vmem>>, vector<1x512xf32>
    %cst_11 = arith.constant 9.99999974E-6 : f32
    %18 = vector.broadcast %cst_11 : f32 to vector<1x512xf32>
    %19 = arith.addf %15, %18 : vector<1x512xf32>
    %20 = math.rsqrt %19 : vector<1x512xf32>
    %21 = arith.mulf %20, %16 : vector<1x512xf32>
    %22 = arith.mulf %9, %21 : vector<1x512xf32>
    %23 = arith.subf %17, %22 : vector<1x512xf32>
    %24 = vector.broadcast %21 : vector<1x512xf32> to vector<8x512xf32>
    %25 = arith.mulf %2, %24 : vector<8x512xf32>
    %26 = vector.broadcast %23 : vector<1x512xf32> to vector<8x512xf32>
    %27 = arith.addf %25, %26 : vector<8x512xf32>
    %cst_12 = arith.constant 0.000000e+00 : f32
    %28 = vector.broadcast %cst_12 : f32 to vector<8x512xf32>
    %29 = arith.maximumf %27, %28 : vector<8x512xf32>
    %c0_13 = arith.constant 0 : index
    %c0_14 = arith.constant 0 : index
    %30 = vector.load %arg3[%c0_13, %c0_14] : memref<512x128xf32, #tpu.memory_space<vmem>>, vector<512x128xf32>
    %cst_15 = arith.constant dense<0.000000e+00> : vector<8x128xf32>
    %31 = tpu.matmul %29, %30, %cst_15 {dimension_numbers = #tpu.dot_dimension_numbers<[1], [0], [0], [1], [0, 0, 1, 1], [], []>} : vector<8x512xf32>, vector<512x128xf32>, vector<8x128xf32> -> vector<8x128xf32>
    %c0_16 = arith.constant 0 : index
    %c0_17 = arith.constant 0 : index
    %32 = vector.load %arg4[%c0_16, %c0_17] : memref<1x128xf32, #tpu.memory_space<vmem>>, vector<1x128xf32>
    %33 = vector.broadcast %32 : vector<1x128xf32> to vector<8x128xf32>
    %34 = arith.addf %31, %33 : vector<8x128xf32>
    %c0_18 = arith.constant 0 : index
    %c0_19 = arith.constant 0 : index
    %35 = vector.load %arg5[%c0_18, %c0_19] : memref<8x128xf32, #tpu.memory_space<vmem>>, vector<8x128xf32>
    tpu.vector_store %arg5[%c0_18, %c0_19], %34 {strides = array<i32>} : memref<8x128xf32, #tpu.memory_space<vmem>>, vector<8x128xf32>,
    return
  }
}

</mosaic_0001>

<bundles_post_ra>
// kernel: tpu_custom_call.1
= control target key start
LH: loop header
LB: loop body
LE: loop exit
PB: predicated region body
PF: predicated region fallthrough
CT: control target
= control target key end

     0   :  { %10 = vsyncpa [#allocation3], 0  ;;  %s1077_s0 = inlined_call_operand.hbm [shape: f32[8,32], index: 0, kind: input, shape index: {}]   ;;  %s1078_s1 = inlined_call_operand.hbm [shape: f32[32,512], index: 1, kind: input, shape index: {}]   ;;  %s1079_s2 = inlined_call_operand.hbm [shape: f32[2,512], index: 2, kind: input, shape index: {}]   ;;  %s1080_s3 = inlined_call_operand.hbm [shape: f32[512,128], index: 3, kind: input, shape index: {}]   ;;  %s1081_s4 = inlined_call_operand.vmem [shape: f32[1,128], index: 4, kind: input, shape index: {}]   ;;  %s1082_s5 = inlined_call_operand.hbm [shape: f32[8,128], index: 5, kind: output, shape index: {}]  }
   0x1   :  { %11 = vsyncpa [#allocation6], 0 }
   0x2   :  { %12 = vsyncpa [#allocation9], 0 }
   0x3   :  { %13 = vsyncpa [#allocation4], 0  ;;  %s945_s18 = smov [#allocation5]   ;;  %s827_s22 = scalar_lea.hbm %s1078_s1, 2048 }
   0x4   :  { %s29_s19 = sshll.u32 %s945_s18, 4  ;;  %p828_p0 = scmp.ne.s32.totalorder %s1078_s1, %s827_s22  ;;  %s30_s19 = int_to_ptr.vmem [resolvable:$true] %s29_s19 }
   0x5   :  { %p831_p1 = scmp.lt.u32.totalorder %s827_s22, %s1078_s1 }
   0x7   :  { %p833_p2 = pnand %p831_p1, %p828_p0 }
   0x9   :  { %836 = shalt.err (!%p833_p2)
}
   0xa   :  { %s837_s27 = scalar_lea.vmem %s30_s19, 2048  ;;  %p842_p4 = scmp.lt.s32.totalorder %s30_s19, %s30_s19 }
   0xb   :  { %p838_p3 = scmp.ne.s32.totalorder %s30_s19, %s837_s27  ;;  %p843_p5 = scmp.lt.s32.totalorder %s837_s27, %s837_s27 }
   0xd   :  { %p844_p6 = por %p843_p5, %p842_p4 }
   0xf   :  { %p845_p7 = pnand %p844_p6, %p838_p3 }
  0x11   :  { %848 = shalt.err (!%p845_p7)
}
  0x12   :  { %s946_s28 = smov 512   ;;  %s947_s29 = smov 32  }
  0x13   :  { %35 = dma.hbm_to_vmem [thread:$0]  %s1078_s1, 2048, %s30_s19, [#allocation6], %s946_s28, %s946_s28, %s947_s29  }
  0x14   :  { %s948_s7 = smov [#allocation2]   ;;  %s949_s9 = smov [#allocation7]  }
  0x15   :  { %s20_s8 = sshll.u32 %s948_s7, 4  ;;  %s42_s10 = sshll.u32 %s949_s9, 4  ;;  %s21_s8 = int_to_ptr.vmem [resolvable:$true] %s20_s8  ;;  %s43_s10 = int_to_ptr.vmem [resolvable:$true] %s42_s10 }
  0x16   :  { %s849_s13 = scalar_lea.hbm %s1077_s0, 128 }
  0x17   :  { %p850_p8 = scmp.ne.s32.totalorder %s1077_s0, %s849_s13  ;;  %p853_p9 = scmp.lt.u32.totalorder %s849_s13, %s1077_s0 }
  0x19   :  { %p855_p10 = pnand %p853_p9, %p850_p8 }
  0x1b   :  { %858 = shalt.err (!%p855_p10)
}
  0x1c   :  { %s859_s1 = scalar_lea.vmem %s21_s8, 128  ;;  %p864_p12 = scmp.lt.s32.totalorder %s21_s8, %s21_s8 }
  0x1d   :  { %p860_p11 = scmp.ne.s32.totalorder %s21_s8, %s859_s1  ;;  %p865_p13 = scmp.lt.s32.totalorder %s859_s1, %s859_s1 }
  0x1f   :  { %p866_p0 = por %p865_p13, %p864_p12 }
  0x21   :  { %p867_p1 = pnand %p866_p0, %p860_p11 }
  0x23   :  { %870 = shalt.err (!%p867_p1)
}
  0x24   :  { %23 = dma.hbm_to_vmem [thread:$0]  %s1077_s0, 128, %s21_s8, [#allocation3]  }
  0x25   :  { %s871_s22 = scalar_lea.hbm %s1079_s2, 128 }
  0x26   :  { %p872_p2 = scmp.ne.s32.totalorder %s1079_s2, %s871_s22  ;;  %p875_p3 = scmp.lt.u32.totalorder %s871_s22, %s1079_s2 }
  0x28   :  { %p877_p4 = pnand %p875_p3, %p872_p2 }
  0x2a   :  { %880 = shalt.err (!%p877_p4)
}
  0x2b   :  { %s881_s27 = scalar_lea.vmem %s43_s10, 128  ;;  %p886_p6 = scmp.lt.s32.totalorder %s43_s10, %s43_s10 }
  0x2c   :  { %p882_p5 = scmp.ne.s32.totalorder %s43_s10, %s881_s27  ;;  %p887_p7 = scmp.lt.s32.totalorder %s881_s27, %s881_s27 }
  0x2e   :  { %p888_p8 = por %p887_p7, %p886_p6 }
  0x30   :  { %p889_p9 = pnand %p888_p8, %p882_p5 }
  0x32   :  { %892 = shalt.err (!%p889_p9)
}
  0x33   :  { %45 = dma.hbm_to_vmem [thread:$0]  %s1079_s2, 128, %s43_s10, [#allocation6]  }
  0x34   :  { %s950_s29 = smov [#allocation8]   ;;  %s893_s8 = scalar_lea.hbm %s1080_s3, 8192 }
  0x35   :  { %s51_s30 = sshll.u32 %s950_s29, 4  ;;  %p894_p10 = scmp.ne.s32.totalorder %s1080_s3, %s893_s8  ;;  %s52_s30 = int_to_ptr.vmem [resolvable:$true] %s51_s30 }
  0x36   :  { %p897_p11 = scmp.lt.u32.totalorder %s893_s8, %s1080_s3 }
  0x38   :  { %p899_p12 = pnand %p897_p11, %p894_p10 }
  0x3a   :  { %902 = shalt.err (!%p899_p12)
}
  0x3b   :  { %s903_s14 = scalar_lea.vmem %s52_s30, 8192  ;;  %p908_p0 = scmp.lt.s32.totalorder %s52_s30, %s52_s30 }
  0x3c   :  { %p904_p13 = scmp.ne.s32.totalorder %s52_s30, %s903_s14  ;;  %p909_p1 = scmp.lt.s32.totalorder %s903_s14, %s903_s14 }
  0x3e   :  { %p910_p2 = por %p909_p1, %p908_p0 }
  0x40   :  { %p911_p3 = pnand %p910_p2, %p904_p13 }
  0x42   :  { %914 = shalt.err (!%p911_p3)
}
  0x43   :  { %s951_s2 = smov 128   ;;  %s952_s10 = smov 8  }
  0x44   :  { %57 = dma.hbm_to_vmem [thread:$0]  %s1080_s3, 8192, %s52_s30, [#allocation9], %s951_s2, %s951_s2, %s952_s10  }
  0x45   :  { %937 = dma.done.wait [#allocation3], 128  }
  0x46   :  { %938 = vsyncadd [#allocation3], 4294967168 }
  0x47   :  { %939 = dma.done.wait [#allocation6], 2176  }
  0x48   :  { %940 = vsyncadd [#allocation6], 4294965120 }
  0x49   :  { %941 = dma.done.wait [#allocation9], 8192  }
  0x4a   :  { %942 = vsyncadd [#allocation9], 4294959104  ;;  %v953_v0 = vmov 0.0   ;;  %v74_v1 = vld [vmem:[#allocation5 + $0x8] sm:$0xff]  ;;  %v76_v3 = vld [vmem:[#allocation5 + $0x18] sm:$0xff]  ;;  %vm89_vm0 = vcmask 261120  }
  0x4b   :  { %157 = vmatprep.mubr.f32.mxu0 %v953_v0  ;;  %228 = vmatprep.mubr.f32.mxu1 %v953_v0  ;;  %v78_v2 = vld [vmem:[#allocation5 + $0x28] sm:$0xff]  ;;  %v80_v5 = vld [vmem:[#allocation5 + $0x38] sm:$0xff]  ;;  %v73_v6 = vld [vmem:[#allocation5] sm:$0xff]  ;;  %s955_s1 = smov [#allocation10]  }
  0x4c   :  { %v728_v4 = vpack.c.bf16 %v78_v2, %v74_v1  ;;  %v77_v7 = vld [vmem:[#allocation5 + $0x20] sm:$0xff]  ;;  %v736_v8 = vpack.c.bf16 %v80_v5, %v76_v3  ;;  %v75_v10 = vld [vmem:[#allocation5 + $0x10] sm:$0xff]  ;;  %v82_v12 = vld [vmem:[#allocation5 + $0x48] sm:$0xff]  ;;  %s644_s18 = sshll.u32 %s955_s1, 4  ;;  %s645_s18 = int_to_ptr.vmem [resolvable:$true] %s644_s18 }
  0x4d   :  { %v730_v9 = vpack.c.bf16 %v77_v7, %v73_v6  ;;  %v79_v11 = vld [vmem:[#allocation5 + $0x30] sm:$0xff]  ;;  %v86_v14 = vld [vmem:[#allocation5 + $0x68] sm:$0xff]  ;;  %v84_v15 = vld [vmem:[#allocation5 + $0x58] sm:$0xff]  ;;  %s915_s19 = scalar_lea.vmem %s645_s18, 128  ;;  %p920_p5 = scmp.lt.s32.totalorder %s645_s18, %s645_s18 }
  0x4e   :  { %729 = vmatprep.subr.bf16.mxu0 %v728_v4  ;;  %v738_v13 = vpack.c.bf16 %v79_v11, %v75_v10  ;;  %v88_v16 = vld [vmem:[#allocation5 + $0x78] sm:$0xff]  ;;  %737 = vmatprep.subr.bf16.mxu1 %v736_v8  ;;  %v732_v17 = vpack.c.bf16 %v86_v14, %v82_v12  ;;  %v81_v19 = vld [vmem:[#allocation5 + $0x40] sm:$0xff]  ;;  %v83_v21 = vld [vmem:[#allocation5 + $0x50] sm:$0xff]  ;;  %p916_p4 = scmp.ne.s32.totalorder %s645_s18, %s915_s19  ;;  %p921_p6 = scmp.lt.s32.totalorder %s915_s19, %s915_s19 }
  0x4f   :  { %731 = vmatpush1.bf16.msra.mxu0 %v730_v9  ;;  %v740_v18 = vpack.c.bf16 %v88_v16, %v84_v15  ;;  %v85_v20 = vld [vmem:[#allocation5 + $0x60] sm:$0xff]  ;;  %v87_v23 = vld [vmem:[#allocation5 + $0x70] sm:$0xff]  ;;  %v72_v25 = vld [vmem:[#allocation2] sm:$0xff] }
  0x50   :  { %739 = vmatpush1.bf16.msra.mxu1 %v738_v13  ;;  %v734_v22 = vpack.c.bf16 %v85_v20, %v81_v19  ;;  %733 = vmatprep.subr.bf16.mxu0 %v732_v17  ;;  %v742_v24 = vpack.c.bf16 %v87_v23, %v83_v21  ;;  %v442_v26 = vld [vmem:[#allocation8 + $0x80] sm:$0xff]  ;;  %v443_v27 = vld [vmem:[#allocation8 + $0x88] sm:$0xff]  ;;  %v444_v38 = vld [vmem:[#allocation8 + $0x90] sm:$0xff]  ;;  %p922_p7 = por %p921_p6, %p920_p5 }
  0x51   :  { %741 = vmatprep.subr.bf16.mxu1 %v740_v18  ;;  %v474_v28 = vld [vmem:[#allocation8 + $0x180] sm:$0xff]  ;;  %v744_v29 = vpack.c.bf16 %v443_v27, %v442_v26  ;;  %v475_v30 = vld [vmem:[#allocation8 + $0x188] sm:$0xff]  ;;  %v445_v39 = vld [vmem:[#allocation8 + $0x98] sm:$0xff] }
  0x52   :  { %v426_v31 = vld [vmem:[#allocation8] sm:$0xff]  ;;  %v427_v32 = vld [vmem:[#allocation8 + $0x8] sm:$0xff]  ;;  %v776_v33 = vpack.c.bf16 %v475_v30, %v474_v28  ;;  %v476_v40 = vld [vmem:[#allocation8 + $0x190] sm:$0xff]  ;;  %v748_v41 = vpack.c.bf16 %v445_v39, %v444_v38  ;;  %p923_p8 = pnand %p922_p7, %p916_p4 }
  0x53   :  { %735 = vmatpush1.bf16.msra.mxu0 %v734_v22  ;;  %v746_v34 = vpack.c.bf16 %v427_v32, %v426_v31  ;;  %v458_v35 = vld [vmem:[#allocation8 + $0x100] sm:$0xff]  ;;  %v459_v36 = vld [vmem:[#allocation8 + $0x108] sm:$0xff]  ;;  %v477_v42 = vld [vmem:[#allocation8 + $0x198] sm:$0xff] }
  0x54   :  { %743 = vmatpush1.bf16.msra.mxu1 %v742_v24  ;;  %745 = vmatprep.subr.bf16.mxu0 %v744_v29  ;;  %v778_v37 = vpack.c.bf16 %v459_v36, %v458_v35  ;;  %v428_v43 = vld [vmem:[#allocation8 + $0x10] sm:$0xff]  ;;  %v429_v44 = vld [vmem:[#allocation8 + $0x18] sm:$0xff]  ;;  %v780_v45 = vpack.c.bf16 %v477_v42, %v476_v40  ;;  %v446_v50 = vld [vmem:[#allocation8 + $0xa0] sm:$0xff] }
  0x55   :  { %777 = vmatprep.subr.bf16.mxu1 %v776_v33  ;;  %v750_v46 = vpack.c.bf16 %v429_v44, %v428_v43  ;;  %v460_v47 = vld [vmem:[#allocation8 + $0x110] sm:$0xff]  ;;  %v461_v48 = vld [vmem:[#allocation8 + $0x118] sm:$0xff]  ;;  %v447_v51 = vld [vmem:[#allocation8 + $0xa8] sm:$0xff] }
  0x56   :  { %655 = vmatmul.mubr.msk.f32.vlgmr.msra.gmra.mrb[0].mxu0 %vm89_vm0, %v72_v25  ;;  %v782_v49 = vpack.c.bf16 %v461_v48, %v460_v47  ;;  %v478_v52 = vld [vmem:[#allocation8 + $0x1a0] sm:$0xff]  ;;  %v752_v53 = vpack.c.bf16 %v447_v51, %v446_v50  ;;  %v479_v54 = vld [vmem:[#allocation8 + $0x1a8] sm:$0xff]  ;;  %v448_v62 = vld [vmem:[#allocation8 + $0xb0] sm:$0xff] }
  0x57   :  { %656 = vmatmul.mubr.msk.f32.vlgmr.msra.gmra.mrb[0].mxu1 %vm89_vm0, %v72_v25  ;;  %747 = vmatpush3.bf16.msra.mxu0 %v746_v34  ;;  %v430_v55 = vld [vmem:[#allocation8 + $0x20] sm:$0xff]  ;;  %v431_v56 = vld [vmem:[#allocation8 + $0x28] sm:$0xff]  ;;  %v784_v57 = vpack.c.bf16 %v479_v54, %v478_v52  ;;  %v449_v63 = vld [vmem:[#allocation8 + $0xb8] sm:$0xff] }
  0x58   :  { %779 = vmatpush3.bf16.msra.mxu1 %v778_v37  ;;  %749 = vmatprep.subr.bf16.mxu0 %v748_v41  ;;  %v754_v58 = vpack.c.bf16 %v431_v56, %v430_v55  ;;  %v462_v59 = vld [vmem:[#allocation8 + $0x120] sm:$0xff]  ;;  %v463_v60 = vld [vmem:[#allocation8 + $0x128] sm:$0xff]  ;;  %v480_v0 = vld [vmem:[#allocation8 + $0x1b0] sm:$0xff]  ;;  %v756_v1 = vpack.c.bf16 %v449_v63, %v448_v62 }
  0x59   :  { %781 = vmatprep.subr.bf16.mxu1 %v780_v45  ;;  %v786_v61 = vpack.c.bf16 %v463_v60, %v462_v59  ;;  %v481_v2 = vld [vmem:[#allocation8 + $0x1b8] sm:$0xff]  ;;  %v432_v3 = vld [vmem:[#allocation8 + $0x30] sm:$0xff]  ;;  %v450_v10 = vld [vmem:[#allocation8 + $0xc0] sm:$0xff] }
  0x5a   :  { %v433_v4 = vld [vmem:[#allocation8 + $0x38] sm:$0xff]  ;;  %v788_v5 = vpack.c.bf16 %v481_v2, %v480_v0  ;;  %v464_v7 = vld [vmem:[#allocation8 + $0x130] sm:$0xff]  ;;  %v451_v11 = vld [vmem:[#allocation8 + $0xc8] sm:$0xff] }
  0x5b   :  { %751 = vmatpush3.bf16.msra.mxu0 %v750_v46  ;;  %v758_v6 = vpack.c.bf16 %v433_v4, %v432_v3  ;;  %v465_v8 = vld [vmem:[#allocation8 + $0x138] sm:$0xff]  ;;  %v482_v12 = vld [vmem:[#allocation8 + $0x1c0] sm:$0xff]  ;;  %v760_v13 = vpack.c.bf16 %v451_v11, %v450_v10  ;;  %v483_v14 = vld [vmem:[#allocation8 + $0x1c8] sm:$0xff] }
  0x5c   :  { %783 = vmatpush3.bf16.msra.mxu1 %v782_v49  ;;  %753 = vmatprep.subr.bf16.mxu0 %v752_v53  ;;  %v790_v9 = vpack.c.bf16 %v465_v8, %v464_v7  ;;  %v434_v15 = vld [vmem:[#allocation8 + $0x40] sm:$0xff]  ;;  %v435_v16 = vld [vmem:[#allocation8 + $0x48] sm:$0xff]  ;;  %v792_v17 = vpack.c.bf16 %v483_v14, %v482_v12  ;;  %v452_v22 = vld [vmem:[#allocation8 + $0xd0] sm:$0xff] }
  0x5d   :  { %785 = vmatprep.subr.bf16.mxu1 %v784_v57  ;;  %v762_v18 = vpack.c.bf16 %v435_v16, %v434_v15  ;;  %v466_v19 = vld [vmem:[#allocation8 + $0x140] sm:$0xff]  ;;  %v467_v20 = vld [vmem:[#allocation8 + $0x148] sm:$0xff]  ;;  %v453_v23 = vld [vmem:[#allocation8 + $0xd8] sm:$0xff] }
  0x5e   :  { %v794_v21 = vpack.c.bf16 %v467_v20, %v466_v19  ;;  %v484_v24 = vld [vmem:[#allocation8 + $0x1d0] sm:$0xff]  ;;  %v764_v25 = vpack.c.bf16 %v453_v23, %v452_v22  ;;  %v485_v26 = vld [vmem:[#allocation8 + $0x1d8] sm:$0xff]  ;;  %v454_v33 = vld [vmem:[#allocation8 + $0xe0] sm:$0xff] }
  0x5f   :  { %755 = vmatpush3.bf16.msra.mxu0 %v754_v58  ;;  %v436_v27 = vld [vmem:[#allocation8 + $0x50] sm:$0xff]  ;;  %v437_v28 = vld [vmem:[#allocation8 + $0x58] sm:$0xff]  ;;  %v796_v29 = vpack.c.bf16 %v485_v26, %v484_v24  ;;  %v455_v35 = vld [vmem:[#allocation8 + $0xe8] sm:$0xff] }
  0x60   :  { %787 = vmatpush3.bf16.msra.mxu1 %v786_v61  ;;  %757 = vmatprep.subr.bf16.mxu0 %v756_v1  ;;  %v766_v30 = vpack.c.bf16 %v437_v28, %v436_v27  ;;  %v468_v31 = vld [vmem:[#allocation8 + $0x150] sm:$0xff]  ;;  %v469_v32 = vld [vmem:[#allocation8 + $0x158] sm:$0xff]  ;;  %v486_v36 = vld [vmem:[#allocation8 + $0x1e0] sm:$0xff]  ;;  %v768_v38 = vpack.c.bf16 %v455_v35, %v454_v33 }
  0x61   :  { %789 = vmatprep.subr.bf16.mxu1 %v788_v5  ;;  %v798_v34 = vpack.c.bf16 %v469_v32, %v468_v31  ;;  %v487_v37 = vld [vmem:[#allocation8 + $0x1e8] sm:$0xff]  ;;  %v438_v40 = vld [vmem:[#allocation8 + $0x60] sm:$0xff]  ;;  %v456_v45 = vld [vmem:[#allocation8 + $0xf0] sm:$0xff] }
  0x62   :  { %v800_v39 = vpack.c.bf16 %v487_v37, %v486_v36  ;;  %v439_v41 = vld [vmem:[#allocation8 + $0x68] sm:$0xff]  ;;  %v470_v42 = vld [vmem:[#allocation8 + $0x160] sm:$0xff]  ;;  %v457_v46 = vld [vmem:[#allocation8 + $0xf8] sm:$0xff] }
  0x63   :  { %759 = vmatpush3.bf16.msra.mxu0 %v758_v6  ;;  %v770_v43 = vpack.c.bf16 %v439_v41, %v438_v40  ;;  %v471_v44 = vld [vmem:[#allocation8 + $0x168] sm:$0xff]  ;;  %v772_v48 = vpack.c.bf16 %v457_v46, %v456_v45  ;;  %v488_v49 = vld [vmem:[#allocation8 + $0x1f0] sm:$0xff]  ;;  %v489_v50 = vld [vmem:[#allocation8 + $0x1f8] sm:$0xff] }
  0x64   :  { %791 = vmatpush3.bf16.msra.mxu1 %v790_v9  ;;  %761 = vmatprep.subr.bf16.mxu0 %v760_v13  ;;  %v802_v47 = vpack.c.bf16 %v471_v44, %v470_v42  ;;  %v440_v51 = vld [vmem:[#allocation8 + $0x70] sm:$0xff]  ;;  %v804_v52 = vpack.c.bf16 %v489_v50, %v488_v49  ;;  %v441_v53 = vld [vmem:[#allocation8 + $0x78] sm:$0xff] }
  0x65   :  { %793 = vmatprep.subr.bf16.mxu1 %v792_v17  ;;  %v472_v54 = vld [vmem:[#allocation8 + $0x170] sm:$0xff]  ;;  %v473_v55 = vld [vmem:[#allocation8 + $0x178] sm:$0xff]  ;;  %v774_v56 = vpack.c.bf16 %v441_v53, %v440_v51 }
  0x66   :  { %v806_v57 = vpack.c.bf16 %v473_v55, %v472_v54 }
  0x67   :  { %763 = vmatpush3.bf16.msra.mxu0 %v762_v18 }
  0x68   :  { %795 = vmatpush3.bf16.msra.mxu1 %v794_v21  ;;  %765 = vmatprep.subr.bf16.mxu0 %v764_v25 }
  0x69   :  { %797 = vmatprep.subr.bf16.mxu1 %v796_v29 }
  0x6b   :  { %767 = vmatpush3.bf16.msra.mxu0 %v766_v30 }
  0x6c   :  { %799 = vmatpush3.bf16.msra.mxu1 %v798_v34  ;;  %769 = vmatprep.subr.bf16.mxu0 %v768_v38 }
  0x6d   :  { %801 = vmatprep.subr.bf16.mxu1 %v800_v39 }
  0x6f   :  { %771 = vmatpush3.bf16.msra.mxu0 %v770_v43 }
  0x70   :  { %803 = vmatpush3.bf16.msra.mxu1 %v802_v47  ;;  %773 = vmatprep.subr.bf16.mxu0 %v772_v48 }
  0x71   :  { %805 = vmatprep.subr.bf16.mxu1 %v804_v52 }
  0x73   :  { %775 = vmatpush3.bf16.msra.mxu0 %v774_v56 }
  0x74   :  { %807 = vmatpush3.bf16.msra.mxu1 %v806_v57 }
 0x129   :  { %v1034_v58 = vpop.f32.mrb[0].mxu0 }
 0x12a   :  { %v235_v59 = vrot.slane %v1034_v58, 4  ;;  %v259_v60 = vmul.f32 %v1034_v58, %v1034_v58  ;;  %v1039_v61 = vpop.f32.mrb[0].mxu1  ;;  %v1041_v62 = vpop.f32.mrb[1].mxu0 }
 0x12b   :  { %v247_v63 = vrot.slane %v1039_v61, 4  ;;  %v261_v0 = vmul.f32 %v1039_v61, %v1039_v61  ;;  %v241_v1 = vrot.slane %v1041_v62, 4  ;;  %v260_v2 = vmul.f32 %v1041_v62, %v1041_v62  ;;  %v1049_v3 = vpop.f32.mrb[1].mxu1 }
 0x12c   :  { %v236_v4 = vadd.f32 %v235_v59, %v1034_v58  ;;  %v263_v5 = vrot.slane %v259_v60, 4  ;;  %v253_v6 = vrot.slane %v1049_v3, 4  ;;  %v262_v7 = vmul.f32 %v1049_v3, %v1049_v3 }
 0x12d   :  { %v248_v8 = vadd.f32 %v247_v63, %v1039_v61  ;;  %v275_v9 = vrot.slane %v261_v0, 4  ;;  %v242_v10 = vadd.f32 %v241_v1, %v1041_v62  ;;  %v269_v11 = vrot.slane %v260_v2, 4 }
 0x12e   :  { %v237_v12 = vrot.slane %v236_v4, 2  ;;  %v264_v13 = vadd.f32 %v263_v5, %v259_v60  ;;  %v254_v14 = vadd.f32 %v253_v6, %v1049_v3  ;;  %v281_v15 = vrot.slane %v262_v7, 4 }
 0x12f   :  { %v249_v16 = vrot.slane %v248_v8, 2  ;;  %v276_v17 = vadd.f32 %v275_v9, %v261_v0  ;;  %v243_v18 = vrot.slane %v242_v10, 2  ;;  %v270_v19 = vadd.f32 %v269_v11, %v260_v2 }
 0x130   :  { %v238_v20 = vadd.f32 %v237_v12, %v236_v4  ;;  %v265_v21 = vrot.slane %v264_v13, 2  ;;  %v255_v22 = vrot.slane %v254_v14, 2  ;;  %v282_v23 = vadd.f32 %v281_v15, %v262_v7 }
 0x131   :  { %v250_v24 = vadd.f32 %v249_v16, %v248_v8  ;;  %v277_v25 = vrot.slane %v276_v17, 2  ;;  %v244_v26 = vadd.f32 %v243_v18, %v242_v10  ;;  %v271_v27 = vrot.slane %v270_v19, 2 }
 0x132   :  { %v239_v28 = vrot.slane %v238_v20, 1  ;;  %v266_v29 = vadd.f32 %v265_v21, %v264_v13  ;;  %v256_v30 = vadd.f32 %v255_v22, %v254_v14  ;;  %v283_v31 = vrot.slane %v282_v23, 2 }
 0x133   :  { %v251_v32 = vrot.slane %v250_v24, 1  ;;  %v278_v33 = vadd.f32 %v277_v25, %v276_v17  ;;  %v245_v34 = vrot.slane %v244_v26, 1  ;;  %v272_v35 = vadd.f32 %v271_v27, %v270_v19  ;;  %v307_v17 = vld [vmem:[#allocation7] ss:$2 sm:$0xf] }
 0x134   :  { %v240_v36 = vadd.f32 %v239_v28, %v238_v20  ;;  %v267_v37 = vrot.slane %v266_v29, 1  ;;  %v257_v38 = vrot.slane %v256_v30, 1  ;;  %v284_v39 = vadd.f32 %v283_v31, %v282_v23 }
 0x135   :  { %v252_v40 = vadd.f32 %v251_v32, %v250_v24  ;;  %v279_v41 = vrot.slane %v278_v33, 1  ;;  %v246_v42 = vadd.f32 %v245_v34, %v244_v26  ;;  %v273_v43 = vrot.slane %v272_v35, 1 }
 0x136   :  { %v268_v44 = vadd.f32 %v267_v37, %v266_v29  ;;  %v287_v45 = vmul.f32 0.125, %v240_v36  ;;  %v258_v46 = vadd.f32 %v257_v38, %v256_v30  ;;  %v285_v47 = vrot.slane %v284_v39, 1 }
 0x137   :  { %v280_v48 = vadd.f32 %v279_v41, %v278_v33  ;;  %v289_v49 = vmul.f32 0.125, %v252_v40  ;;  %v274_v50 = vadd.f32 %v273_v43, %v272_v35  ;;  %v288_v51 = vmul.f32 0.125, %v246_v42 }
 0x138   :  { %v291_v52 = vmul.f32 0.125, %v268_v44  ;;  %v295_v53 = vmul.f32 %v287_v45, %v287_v45  ;;  %v286_v54 = vadd.f32 %v285_v47, %v284_v39  ;;  %v290_v55 = vmul.f32 0.125, %v258_v46 }
 0x139   :  { %v293_v56 = vmul.f32 0.125, %v280_v48  ;;  %v297_v57 = vmul.f32 %v289_v49, %v289_v49  ;;  %v292_v59 = vmul.f32 0.125, %v274_v50  ;;  %v296_v60 = vmul.f32 %v288_v51, %v288_v51 }
 0x13a   :  { %v299_v63 = vsub.f32 %v291_v52, %v295_v53  ;;  %v294_v0 = vmul.f32 0.125, %v286_v54  ;;  %v298_v1 = vmul.f32 %v290_v55, %v290_v55  ;;  %v319_v2 = vlaneseq  ;;  %v309_v53 = vld [vmem:[#allocation7 + $0x1] ss:$2 sm:$0xf] }
 0x13b   :  { %v301_v4 = vsub.f32 %v293_v56, %v297_v57  ;;  %v300_v5 = vsub.f32 %v292_v59, %v296_v60  ;;  %v954_v22 = vmov 1966171168  }
 0x13c   :  { %v303_v6 = vmax.f32 %v299_v63, 0.0  ;;  %v302_v7 = vsub.f32 %v294_v0, %v298_v1  ;;  %v320_v12 = vshrl.u32 %v319_v2, 7  ;;  %v354_v23 = vunpack.c.l.s4 %v954_v22 }
 0x13d   :  { %v305_v8 = vmax.f32 %v301_v4, 0.0  ;;  %v304_v9 = vmax.f32 %v300_v5, 0.0 }
 0x13e   :  { %v310_v10 = vadd.f32 1e-05, %v303_v6  ;;  %v306_v11 = vmax.f32 %v302_v7, 0.0  ;;  %v321_v16 = vsub.s32 0, %v320_v12  ;;  %v329_v18 = vsub.s32 2, %v320_v12 }
 0x13f   :  { %v312_v13 = vadd.f32 1e-05, %v305_v8  ;;  %v311_v14 = vadd.f32 1e-05, %v304_v9  ;;  %v325_v19 = vsub.s32 1, %v320_v12  ;;  %v333_v20 = vsub.s32 3, %v320_v12 }
 0x140   :  { %819 = vrsqrt.f32 %v310_v10  ;;  %v313_v15 = vadd.f32 1e-05, %v306_v11  ;;  %v322_v21 = vrot.slane %v307_v17, %v321_v16  ;;  %v330_v24 = vrot.slane %v307_v17, %v329_v18 }
 0x141   :  { %821 = vrsqrt.f32 %v312_v13  ;;  %v326_v25 = vrot.slane %v307_v17, %v325_v19  ;;  %v334_v27 = vrot.slane %v307_v17, %v333_v20  ;;  %v355_v30 = vunpack.c.0.s8 %v354_v23 }
 0x142   :  { %823 = vrsqrt.f32 %v311_v14 }
 0x143   :  { %825 = vrsqrt.f32 %v313_v15  ;;  %v358_v39 = vsub.s32 %v355_v30, %v320_v12 }
 0x14a   :  { %v820_v26 = vpop.eup %819 }
 0x14b   :  { %v822_v28 = vpop.eup %821  ;;  %v339_v29 = vmul.f32 %v820_v26, %v322_v21 }
 0x14c   :  { %v824_v31 = vpop.eup %823  ;;  %v341_v32 = vmul.f32 %v822_v28, %v330_v24 }
 0x14d   :  { %v826_v33 = vpop.eup %825  ;;  %v343_v34 = vmul.f32 %v339_v29, %v287_v45  ;;  %v340_v35 = vmul.f32 %v824_v31, %v326_v25  ;;  %v380_v47 = vrot.slane %v339_v29, %v321_v16 }
 0x14e   :  { %v345_v36 = vmul.f32 %v341_v32, %v289_v49  ;;  %v342_v37 = vmul.f32 %v826_v33, %v334_v27  ;;  %v388_v48 = vrot.slane %v341_v32, %v321_v16 }
 0x14f   :  { %v344_v38 = vmul.f32 %v340_v35, %v288_v51  ;;  %v384_v50 = vrot.slane %v340_v35, %v321_v16  ;;  %v393_v45 = vmul.f32 %v380_v47, %v1034_v58 }
 0x150   :  { %v346_v40 = vmul.f32 %v342_v37, %v290_v55  ;;  %v392_v52 = vrot.slane %v342_v37, %v321_v16  ;;  %v395_v49 = vmul.f32 %v388_v48, %v1039_v61 }
 0x151   :  { %v351_v41 = vcombine.low %v343_v34, %v344_v38  ;;  %v394_v51 = vmul.f32 %v384_v50, %v1041_v62  ;;  %v657_v62 = vld [vmem:[%s1081_s4] ss:$0 sm:$0xff] }
 0x152   :  { %v352_v42 = vcombine.low %v345_v36, %v346_v40  ;;  %v396_v55 = vmul.f32 %v392_v52, %v1049_v3 }
 0x153   :  { %v359_v43 = vrot.slane %v351_v41, %v358_v39 }
 0x154   :  { %v366_v44 = vrot.slane %v352_v42, %v358_v39 }
 0x156   :  { %v367_v46 = vcombine.low %v359_v43, %v366_v44 }
 0x158   :  { %v374_v54 = vrot.slane %v367_v46, %v358_v39 }
 0x15a   :  { %v376_v56 = vsub.f32 %v309_v53, %v374_v54 }
 0x15c   :  { %v405_v57 = vrot.slane %v376_v56, %v325_v19  ;;  %v413_v59 = vrot.slane %v376_v56, %v333_v20  ;;  %v401_v60 = vrot.slane %v376_v56, %v321_v16  ;;  %v409_v63 = vrot.slane %v376_v56, %v329_v18 }
 0x15e   :  { %v419_v0 = vadd.f32 %v405_v57, %v394_v51  ;;  %v421_v1 = vadd.f32 %v413_v59, %v396_v55  ;;  %v418_v2 = vadd.f32 %v401_v60, %v393_v45  ;;  %v420_v4 = vadd.f32 %v409_v63, %v395_v49 }
 0x160   :  { %v423_v5 = vmax.f32 %v419_v0, 0.0  ;;  %v425_v6 = vmax.f32 %v421_v1, 0.0  ;;  %v422_v7 = vmax.f32 %v418_v2, 0.0  ;;  %v424_v8 = vmax.f32 %v420_v4, 0.0 }
 0x162   :  { %561 = vmatprep.mubr.f32.mxu0 %v423_v5  ;;  %631 = vmatprep.mubr.f32.mxu1 %v425_v6 }
 0x163   :  { %562 = vmatmul.mubr.f32.vlgmr.msra.gmra.mrb[2].mxu0 %v422_v7  ;;  %632 = vmatmul.mubr.f32.vlgmr.msra.gmra.mrb[2].mxu1 %v424_v8 }
 0x236   :  { %v690_v58 = vpop.f32.mrb[2].mxu0  ;;  %v725_v61 = vpop.f32.mrb[2].mxu1 }
 0x237   :  { %v691_v3 = vpop.f32.mrb[3].mxu0  ;;  %v726_v9 = vpop.f32.mrb[3].mxu1 }
 0x238   :  { %v692_v10 = vadd.f32 %v691_v3, %v690_v58  ;;  %v727_v11 = vadd.f32 %v726_v9, %v725_v61 }
 0x23a   :  { %v564_v12 = vadd.f32 %v692_v10, %v657_v62 }
 0x23c   :  { %v634_v13 = vadd.f32 %v727_v11, %v564_v12 }
 0x23e   :  { %637 = vst [vmem:[#allocation10] sm:$0xff] %v634_v13 }
 0x23f   :  { %926 = shalt.err (!%p923_p8)
}
 0x240   :  { %s927_s4 = scalar_lea.hbm %s1082_s5, 128 }
 0x241   :  { %p928_p9 = scmp.ne.s32.totalorder %s1082_s5, %s927_s4  ;;  %p931_p10 = scmp.lt.u32.totalorder %s927_s4, %s1082_s5 }
 0x243   :  { %p933_p11 = pnand %p931_p10, %p928_p9 }
 0x245   :  { %936 = shalt.err (!%p933_p11)
}
 0x246   :  { %647 = dma.vmem_to_hbm [thread:$0]  %s645_s18, 128, %s1082_s5, [#allocation4]  }
 0x247   :  { %943 = dma.done.wait [#allocation4], 128  }
 0x248   :  { %944 = vsyncadd [#allocation4], 4294967168 }
 0x249   :  { %651 = vsyncpa [#allocation3], 1 }
 0x24a   :  { %652 = vsyncpa [#allocation6], 1 }
 0x24b   :  { %653 = vsyncpa [#allocation9], 1 }
 0x24c   :  { %654 = vsyncpa [#allocation4], 1 }

</bundles_post_ra>
